<compile_context>
chip_gen: v5e
topology: v5e:2x2
jax: 0.10.0
libtpu: 0.0.40
codegen_flags: <defaults>
</compile_context>

<pallas_src>
import jax
import jax.numpy as jnp
from jax.experimental import pallas as pl
from jax.experimental.pallas import tpu as pltpu


_TARGET_BLOCK_BYTES = 2 << 20   # ~2 MiB/block: ~85% of HBM roofline; VMEM-safe
_MAX_LANES = 32768              # widest lane-dense last dim we try


# --------------------------------------------------------------------------
# Primary materialization: one direct HBM -> HBM DMA (no VMEM staging).
# --------------------------------------------------------------------------
def _hbm_copy_kernel(x_hbm, o_hbm, sem):
    cp = pltpu.make_async_copy(x_hbm, o_hbm, sem)
    cp.start()
    cp.wait()


def _materialize_dma(x_sq):
    if x_sq.size == 0:
        return x_sq
    was_scalar = x_sq.ndim == 0
    x_in = jnp.reshape(x_sq, (1,)) if was_scalar else x_sq
    nbytes = x_in.size * jnp.dtype(x_in.dtype).itemsize
    out = pl.pallas_call(
        _hbm_copy_kernel,
        out_shape=jax.ShapeDtypeStruct(x_in.shape, x_in.dtype),
        in_specs=[pl.BlockSpec(memory_space=pl.ANY)],
        out_specs=pl.BlockSpec(memory_space=pl.ANY),
        scratch_shapes=[pltpu.SemaphoreType.DMA],
        compiler_params=pltpu.CompilerParams(has_side_effects=True),
        cost_estimate=pl.CostEstimate(
            flops=0, transcendentals=0, bytes_accessed=2 * nbytes),
    )(x_in)
    return jnp.reshape(out, ()) if was_scalar else out


# --------------------------------------------------------------------------
# Optional pipelined-through-VMEM tiled copy (lane-dense, byte-budgeted blocks).
# --------------------------------------------------------------------------
def _identity_copy_kernel(x_ref, o_ref):
    o_ref[...] = x_ref[...]


def _pick_block_rows(rows, lanes, dtype):
    itemsize = jnp.dtype(dtype).itemsize
    sub = max(8, 32 // itemsize)                 # sublane packing: 8/16/32
    # Byte-budgeted block rows, rounded down to the sublane multiple.
    br = max(sub, (_TARGET_BLOCK_BYTES // (lanes * itemsize)) // sub * sub)
    # v7x megacore: ensure the single "parallel" grid axis has >= 2 steps
    # whenever the row extent allows it (no-op for single-TC v5e/v6e).
    if rows > sub:
        half = -(-rows // 2)                     # cdiv(rows, 2)
        half = -(-half // sub) * sub             # round up to sublane multiple
        br = min(br, half)
    return min(br, rows)


def _tiled_identity_copy(x2d, block_rows, lanes):
    rows = x2d.shape[0]
    nbytes = x2d.size * jnp.dtype(x2d.dtype).itemsize
    return pl.pallas_call(
        _identity_copy_kernel,
        out_shape=jax.ShapeDtypeStruct(x2d.shape, x2d.dtype),
        grid=(pl.cdiv(rows, block_rows),),
        in_specs=[pl.BlockSpec((block_rows, lanes), lambda i: (i, 0))],
        out_specs=pl.BlockSpec((block_rows, lanes), lambda i: (i, 0)),
        compiler_params=pltpu.CompilerParams(
            dimension_semantics=("parallel",)),
        cost_estimate=pl.CostEstimate(
            flops=0, transcendentals=0, bytes_accessed=2 * nbytes),
    )(x2d)


def _materialize_tiled(x_sq):
    total = x_sq.size
    if x_sq.ndim == 0 or total == 0:
        return _materialize_dma(x_sq)

    # Widest multiple-of-128 lane dim that divides the flat size.
    lanes = None
    cand = _MAX_LANES
    while cand >= 128:
        if total % cand == 0:
            lanes = cand
            break
        cand //= 2
    if lanes is None:
        # Not a multiple of 128: use the DMA path (no layout constraints).
        return _materialize_dma(x_sq)

    rows = total // lanes
    block_rows = _pick_block_rows(rows, lanes, x_sq.dtype)
    x2d = jnp.reshape(x_sq, (rows, lanes))
    out = _tiled_identity_copy(x2d, block_rows, lanes)
    return jnp.reshape(out, x_sq.shape)


_materialize_dma_jit = jax.jit(_materialize_dma)
_materialize_tiled_jit = jax.jit(_materialize_tiled)


# --------------------------------------------------------------------------
# Public wrapper: torch.Tensor.squeeze() equivalent.
# --------------------------------------------------------------------------
def squeeze_pallas(x: jax.Array, *, force_pallas_copy: bool = False,
                   tiled: bool = False) -> jax.Array:
    """Drop all size-1 dimensions (torch squeeze()).

    Default: metadata-only reshape (zero HBM traffic).
    force_pallas_copy=True: explicit materialization via a single HBM->HBM DMA
    (or the pipelined VMEM tiled copy if tiled=True).
    """
    squeezed_shape = tuple(d for d in x.shape if d != 1)
    x_sq = jnp.reshape(x, squeezed_shape)
    if not force_pallas_copy:
        return x_sq
    if tiled:
        return _materialize_tiled_jit(x_sq)
    return _materialize_dma_jit(x_sq)


if __name__ == "__main__":
    key = jax.random.PRNGKey(0)
    # NCHW input with a size-1 channel dim so squeeze() actually removes a dim:
    # (2, 1, 16, 16) -> (2, 16, 16)
    x = jax.random.normal(key, (2, 1, 16, 16), dtype=jnp.float32)

    y_fast = squeeze_pallas(x)                                        # metadata only
    y_dma = jax.block_until_ready(squeeze_pallas(x, force_pallas_copy=True))
    y_tiled = jax.block_until_ready(
        squeeze_pallas(x, force_pallas_copy=True, tiled=True))

    # Non-128-divisible flat size: tiled path transparently falls back to DMA.
    x_odd = jax.random.normal(jax.random.PRNGKey(0), (2, 1, 5, 7), jnp.float32)
    y_odd = jax.block_until_ready(
        squeeze_pallas(x_odd, force_pallas_copy=True, tiled=True))

    y_ref = jnp.squeeze(x)
    assert y_fast.shape == y_dma.shape == y_tiled.shape == y_ref.shape == (2, 16, 16)
    assert y_dma.dtype == x.dtype and y_tiled.dtype == x.dtype
    assert bool(jnp.allclose(y_fast, y_ref)), "fast path mismatch vs reference"
    assert bool(jnp.allclose(y_dma, y_ref)), "DMA copy mismatch vs reference"
    assert bool(jnp.allclose(y_tiled, y_ref)), "tiled copy mismatch vs reference"
    assert y_odd.shape == (2, 5, 7)
    assert bool(jnp.allclose(y_odd, jnp.squeeze(x_odd))), "odd-size copy mismatch"

    print("KERNEL_OK")
</pallas_src>

<mosaic_0001>
module attributes {stable_mosaic.version = 11 : i64} {
  func.func @_hbm_copy_kernel(%arg0: memref<2x16x16xf32, #tpu.memory_space<any>>, %arg1: memref<2x16x16xf32, #tpu.memory_space<any>>, %arg2: memref<!tpu.dma_semaphore, #tpu.memory_space<semaphore_mem>>) attributes {dimension_semantics = [], scalar_prefetch = 0 : i64, scratch_operands = 1 : i64, tpu.core_type = #tpu.core_type<tc>} {
    tpu.enqueue_dma source(%arg0 : memref<2x16x16xf32, #tpu.memory_space<any>>) target(%arg1 : memref<2x16x16xf32, #tpu.memory_space<any>>) target_semaphore(%arg2 : memref<!tpu.dma_semaphore, #tpu.memory_space<semaphore_mem>>)
    tpu.wait_dma2 semaphore(%arg2 : memref<!tpu.dma_semaphore, #tpu.memory_space<semaphore_mem>>) src(%arg0 : memref<2x16x16xf32, #tpu.memory_space<any>>) dst(%arg1 : memref<2x16x16xf32, #tpu.memory_space<any>>)
    return
  }
}

</mosaic_0001>

<bundles_post_ra>
// kernel: _materialize_dma.1
= control target key start
LH: loop header
LB: loop body
LE: loop exit
PB: predicated region body
PF: predicated region fallthrough
CT: control target
= control target key end

     0   :  { %s33_s12 = smov [#allocation2]   ;;  %s34_s13 = smov [#allocation3]   ;;  %s52_s0 = inlined_call_operand.hbm [shape: f32[2,16,16], index: 0, kind: input, shape index: {}]   ;;  %s53_s1 = inlined_call_operand.hbm [shape: f32[2,16,16], index: 1, kind: output, shape index: {}]  }
   0x1   :  { %s10_s8 = sshll.u32 %s52_s0, 4  ;;  %s12_s11 = sshll.u32 %s53_s1, 4  ;;  %s11_s8 = int_to_ptr.hbm [resolvable:$true] %s10_s8  ;;  %s13_s11 = int_to_ptr.hbm [resolvable:$true] %s12_s11 }
   0x2   :  { %s35_s14 = smov 0  }
   0x3   :  { %16 = dma.general %s11_s8, 512, %s13_s11, %s33_s12, %s34_s13, [#allocation4], %s35_s14, 0  }
   0x4   :  { %31 = dma.done.wait [#allocation2], 512 }
   0x5   :  { %32 = vsyncadd [#allocation2], 4294966784 }
   0x6   :  { %21 = vsyncmov [#allocation2] }
   0x9   :  { %s22_s15 = vpop.sfrf %21 }
   0xa   :  { %p27_p0 = scmp.ne.s32.totalorder %s22_s15, 0 }
   0xc   :  { %26 = shalt.err (%p27_p0)  }

</bundles_post_ra>
